<compile_context>
chip_gen: v7x
topology: tpu7x:2x2x1
jax: 0.10.0
libtpu: 0.0.40
codegen_flags: <defaults>
</compile_context>

<pallas_src>
import functools

import jax
import jax.numpy as jnp
from jax.experimental import pallas as pl
from jax.experimental.pallas import tpu as pltpu

_LANE = 128          # lane-dense padded class dimension
_NEG = -1e30         # bias for padded (fake) classes


def _round_up(x, m):
    return (x + m - 1) // m * m


# ------------------------------- Pallas kernel -------------------------------


def _corect_kernel(x_ref, rb_ref, w1_ref, w2_ref, b2_ref, logp_ref):
    # Fused encoder + classifier lin1:  x_cat @ (blockdiag(Wa,Wt,Wv) @ W1)
    hid = jnp.dot(x_ref[...], w1_ref[...], preferred_element_type=jnp.float32)
    # rb_ref already contains  b1 + [ba,bt,bv]@W1 + spk@(W1a+W1t+W1v)  per row.
    hid = jnp.maximum(hid + rb_ref[...], 0.0)

    # Classifier lin2 (padded to 128 lanes; pad columns have bias -1e30).
    scores = jnp.dot(hid, w2_ref[...],
                     preferred_element_type=jnp.float32) + b2_ref[...]

    # log_softmax over the lane axis (pad lanes underflow to 0 in prob space).
    m = jnp.max(scores, axis=-1, keepdims=True)
    lse = m + jnp.log(jnp.sum(jnp.exp(scores - m), axis=-1, keepdims=True))
    logp_ref[...] = scores - lse


# ----------------------------- dense device path -----------------------------


@functools.partial(jax.jit, static_argnames=("tile_n",))
def corect_dense_logprob(a, t, v, speaker, params, *, tile_n=1024):
    """Computes log_softmax(classifier(encoder(...))) for every dense row.

    a, t, v:  [N, a_dim] / [N, t_dim] / [N, v_dim]
    speaker:  [N] int32
    Returns:  log_prob [N, tag_size]
    """
    N = a.shape[0]
    g = params["Wa"].shape[1]
    h_dim = params["W1"].shape[1]
    tag = params["W2"].shape[1]

    # ---- one-off weight fusion (tiny matmuls, done by XLA outside the grid) ----
    W1 = params["W1"]
    W1a, W1t, W1v = W1[:g], W1[g:2 * g], W1[2 * g:3 * g]
    W1_fused = jnp.concatenate(
        [params["Wa"] @ W1a, params["Wt"] @ W1t, params["Wv"] @ W1v],
        axis=0)                                                     # [Kcat, h]
    bias_const = (params["ba"] @ W1a + params["bt"] @ W1t
                  + params["bv"] @ W1v + params["b1"])              # [1, h]
    spk_term = params["speaker_emb"] @ (W1a + W1t + W1v)            # [S, h]
    rowbias = spk_term[speaker] + bias_const                        # [N, h]

    x_cat = jnp.concatenate([a, t, v], axis=-1)                     # [N, Kcat]

    # Lane-dense classifier head: pad class dim to 128.
    W2p = jnp.zeros((h_dim, _LANE), jnp.float32).at[:, :tag].set(params["W2"])
    b2p = jnp.full((1, _LANE), _NEG, jnp.float32).at[:, :tag].set(params["b2"])

    # Pad rows to a multiple of the tile (no divisibility assumption).
    tile = min(tile_n, _round_up(N, 8))
    Npad = _round_up(N, tile)
    if Npad != N:
        x_cat = jnp.pad(x_cat, ((0, Npad - N), (0, 0)))
        rowbias = jnp.pad(rowbias, ((0, Npad - N), (0, 0)))

    Kcat = x_cat.shape[1]

    logp_pad = pl.pallas_call(
        _corect_kernel,
        grid=(Npad // tile,),
        in_specs=[
            pl.BlockSpec((tile, Kcat), lambda i: (i, 0)),     # x_cat rows
            pl.BlockSpec((tile, h_dim), lambda i: (i, 0)),    # per-row bias
            pl.BlockSpec((Kcat, h_dim), lambda i: (0, 0)),    # fused W1 (resident)
            pl.BlockSpec((h_dim, _LANE), lambda i: (0, 0)),   # padded W2 (resident)
            pl.BlockSpec((1, _LANE), lambda i: (0, 0)),       # padded b2 (resident)
        ],
        out_specs=pl.BlockSpec((tile, _LANE), lambda i: (i, 0)),
        out_shape=jax.ShapeDtypeStruct((Npad, _LANE), jnp.float32),
        compiler_params=pltpu.CompilerParams(
            dimension_semantics=("parallel",)),
    )(x_cat, rowbias, W1_fused, W2p, b2p)

    return logp_pad[:N, :tag]


# ------------------------------ Python wrapper -------------------------------


def init_params(key, a_dim, t_dim, v_dim, g_dim, h_dim, tag_size, n_speakers):
    ks = jax.random.split(key, 12)
    scale = lambda d: 1.0 / jnp.sqrt(jnp.float32(d))
    return {
        "Wa": jax.random.normal(ks[0], (a_dim, g_dim), jnp.float32) * scale(a_dim),
        "ba": jax.random.normal(ks[1], (1, g_dim), jnp.float32) * 0.01,
        "Wt": jax.random.normal(ks[2], (t_dim, g_dim), jnp.float32) * scale(t_dim),
        "bt": jax.random.normal(ks[3], (1, g_dim), jnp.float32) * 0.01,
        "Wv": jax.random.normal(ks[4], (v_dim, g_dim), jnp.float32) * scale(v_dim),
        "bv": jax.random.normal(ks[5], (1, g_dim), jnp.float32) * 0.01,
        "W1": jax.random.normal(ks[6], (3 * g_dim, h_dim), jnp.float32) * scale(3 * g_dim),
        "b1": jax.random.normal(ks[7], (1, h_dim), jnp.float32) * 0.01,
        "W2": jax.random.normal(ks[8], (h_dim, tag_size), jnp.float32) * scale(h_dim),
        "b2": jax.random.normal(ks[9], (1, tag_size), jnp.float32) * 0.01,
        "speaker_emb": jax.random.normal(ks[10], (n_speakers, g_dim), jnp.float32),
    }


def corect_forward(data, params):
    """Mirrors CORECT_real.forward(data) -> y_hat (class index per valid node)."""
    a = data["audio_tensor"]            # [B, L, a_dim]
    t = data["text_tensor"]             # [B, L, t_dim]
    v = data["visual_tensor"]           # [B, L, v_dim]
    speaker = data["speaker_tensor"]    # [B, L] int
    lengths = data["text_len_tensor"]   # [B] int

    B, L, _ = a.shape
    N = B * L

    logp = corect_dense_logprob(
        a.reshape(N, -1), t.reshape(N, -1), v.reshape(N, -1),
        speaker.reshape(N), params)                          # [N, tag]

    pred = jnp.argmax(logp, axis=-1)                         # [N] (first-max, as torch)

    # feature_packing / multi_concat keep only the first len_j positions of each
    # dialogue, batch-major.  Vectorized on device; one host sync for the count.
    mask = (jnp.arange(L)[None, :] < lengths[:, None]).reshape(-1)
    total = int(jnp.sum(lengths))                            # single device->host sync
    idx = jnp.nonzero(mask, size=total)[0]
    y_hat = pred[idx]                                        # [sum(lengths)]
    return y_hat, logp


def _reference_logprob(data, params):
    """Unfused pure-JAX reference of the original module's math (for checking)."""
    B, L, _ = data["audio_tensor"].shape
    a = data["audio_tensor"].reshape(B * L, -1)
    t = data["text_tensor"].reshape(B * L, -1)
    v = data["visual_tensor"].reshape(B * L, -1)
    spk = params["speaker_emb"][data["speaker_tensor"].reshape(-1)]
    ea = a @ params["Wa"] + params["ba"] + spk
    et = t @ params["Wt"] + params["bt"] + spk
    ev = v @ params["Wv"] + params["bv"] + spk
    h = jnp.concatenate([ea, et, ev], axis=-1)
    hid = jnp.maximum(h @ params["W1"] + params["b1"], 0.0)
    scores = hid @ params["W2"] + params["b2"]
    return jax.nn.log_softmax(scores, axis=-1)


# ----------------------------------- main ------------------------------------


if __name__ == "__main__":
    # Small, deterministic configuration.
    B, L = 2, 8                       # batch (dialogues), max seq length
    a_dim, t_dim, v_dim = 32, 64, 48  # args.dataset_embedding_dims['iemocap']
    g_dim = h_dim = 32                # args.hidden_size
    tag_size = 6                      # iemocap labels
    n_speakers = 2                    # iemocap speakers

    key = jax.random.PRNGKey(0)
    k_par, k_a, k_t, k_v, k_s = jax.random.split(key, 5)

    params = init_params(k_par, a_dim, t_dim, v_dim, g_dim, h_dim,
                         tag_size, n_speakers)

    data = {
        "audio_tensor": jax.random.normal(k_a, (B, L, a_dim), jnp.float32),
        "text_tensor": jax.random.normal(k_t, (B, L, t_dim), jnp.float32),
        "visual_tensor": jax.random.normal(k_v, (B, L, v_dim), jnp.float32),
        "speaker_tensor": jax.random.randint(k_s, (B, L), 0, n_speakers),
        "text_len_tensor": jnp.array([8, 5], dtype=jnp.int32),
    }

    y_hat, logp = corect_forward(data, params)
    y_hat = jax.block_until_ready(y_hat)
    logp = jax.block_until_ready(logp)

    expected_len = int(jnp.sum(data["text_len_tensor"]))
    assert y_hat.shape == (expected_len,), y_hat.shape
    assert logp.shape == (B * L, tag_size), logp.shape
    # log_softmax rows must sum to 1 in prob space.
    assert bool(jnp.allclose(jnp.sum(jnp.exp(logp), axis=-1), 1.0, atol=1e-4))

    # Check the fused kernel against the unfused reference math.
    ref = _reference_logprob(data, params)
    assert bool(jnp.allclose(logp, ref, atol=1e-3, rtol=1e-3)), \
        float(jnp.max(jnp.abs(logp - ref)))
    assert bool(jnp.all(jnp.argmax(logp, axis=-1) == jnp.argmax(ref, axis=-1)))

    print("KERNEL_OK")
</pallas_src>

<mosaic_0001>
module attributes {stable_mosaic.version = 11 : i64} {
  func.func @_corect_kernel(%arg0: i32, %arg1: memref<16x144xf32, #tpu.memory_space<vmem>>, %arg2: memref<16x32xf32, #tpu.memory_space<vmem>>, %arg3: memref<144x32xf32, #tpu.memory_space<vmem>>, %arg4: memref<32x128xf32, #tpu.memory_space<vmem>>, %arg5: memref<1x128xf32, #tpu.memory_space<vmem>>, %arg6: memref<16x128xf32, #tpu.memory_space<vmem>>) attributes {dimension_semantics = [#tpu.dimension_semantics<parallel>], iteration_bounds = array<i64: 1>, scalar_prefetch = 0 : i64, scratch_operands = 0 : i64, tpu.core_type = #tpu.core_type<tc>, window_params = [{transform_indices = @transform_0, window_bounds = array<i64: 16, 144>}, {transform_indices = @transform_1, window_bounds = array<i64: 16, 32>}, {pipeline_mode = #tpu.pipeline_mode<synchronous>, transform_indices = @transform_2, window_bounds = array<i64: 144, 32>}, {pipeline_mode = #tpu.pipeline_mode<synchronous>, transform_indices = @transform_3, window_bounds = array<i64: 32, 128>}, {pipeline_mode = #tpu.pipeline_mode<synchronous>, transform_indices = @transform_4, window_bounds = array<i64: 1, 128>}, {transform_indices = @transform_5, window_bounds = array<i64: 16, 128>}]} {
    %c0 = arith.constant 0 : index
    %c0_0 = arith.constant 0 : index
    %0 = vector.load %arg1[%c0, %c0_0] : memref<16x144xf32, #tpu.memory_space<vmem>>, vector<16x144xf32>
    %c0_1 = arith.constant 0 : index
    %c0_2 = arith.constant 0 : index
    %1 = vector.load %arg3[%c0_1, %c0_2] : memref<144x32xf32, #tpu.memory_space<vmem>>, vector<144x32xf32>
    %cst = arith.constant dense<0.000000e+00> : vector<16x32xf32>
    %2 = tpu.matmul %0, %1, %cst {dimension_numbers = #tpu.dot_dimension_numbers<[1], [0], [0], [1], [0, 0, 1, 1], [], []>} : vector<16x144xf32>, vector<144x32xf32>, vector<16x32xf32> -> vector<16x32xf32>
    %c0_3 = arith.constant 0 : index
    %c0_4 = arith.constant 0 : index
    %3 = vector.load %arg2[%c0_3, %c0_4] : memref<16x32xf32, #tpu.memory_space<vmem>>, vector<16x32xf32>
    %4 = arith.addf %2, %3 : vector<16x32xf32>
    %cst_5 = arith.constant 0.000000e+00 : f32
    %5 = vector.broadcast %cst_5 : f32 to vector<16x32xf32>
    %6 = arith.maximumf %4, %5 : vector<16x32xf32>
    %c0_6 = arith.constant 0 : index
    %c0_7 = arith.constant 0 : index
    %7 = vector.load %arg4[%c0_6, %c0_7] : memref<32x128xf32, #tpu.memory_space<vmem>>, vector<32x128xf32>
    %cst_8 = arith.constant dense<0.000000e+00> : vector<16x128xf32>
    %8 = tpu.matmul %6, %7, %cst_8 {dimension_numbers = #tpu.dot_dimension_numbers<[1], [0], [0], [1], [0, 0, 1, 1], [], []>} : vector<16x32xf32>, vector<32x128xf32>, vector<16x128xf32> -> vector<16x128xf32>
    %c0_9 = arith.constant 0 : index
    %c0_10 = arith.constant 0 : index
    %9 = vector.load %arg5[%c0_9, %c0_10] : memref<1x128xf32, #tpu.memory_space<vmem>>, vector<1x128xf32>
    %10 = vector.broadcast %9 : vector<1x128xf32> to vector<16x128xf32>
    %11 = arith.addf %8, %10 : vector<16x128xf32>
    %cst_11 = arith.constant dense<0xFF800000> : vector<16xf32>
    %12 = vector.multi_reduction <maximumf>, %11, %cst_11 [1] : vector<16x128xf32> to vector<16xf32>
    %13 = vector.shape_cast %12 : vector<16xf32> to vector<16x1xf32>
    %14 = vector.broadcast %13 : vector<16x1xf32> to vector<16x128xf32>
    %15 = arith.subf %11, %14 : vector<16x128xf32>
    %16 = math.exp %15 : vector<16x128xf32>
    %cst_12 = arith.constant dense<0.000000e+00> : vector<16xf32>
    %17 = vector.multi_reduction <add>, %16, %cst_12 [1] : vector<16x128xf32> to vector<16xf32>
    %18 = vector.shape_cast %17 : vector<16xf32> to vector<16x1xf32>
    %19 = math.log %18 : vector<16x1xf32>
    %20 = arith.addf %13, %19 : vector<16x1xf32>
    %21 = vector.broadcast %20 : vector<16x1xf32> to vector<16x128xf32>
    %22 = arith.subf %11, %21 : vector<16x128xf32>
    %c0_13 = arith.constant 0 : index
    %c0_14 = arith.constant 0 : index
    %23 = vector.load %arg6[%c0_13, %c0_14] : memref<16x128xf32, #tpu.memory_space<vmem>>, vector<16x128xf32>
    tpu.vector_store %arg6[%c0_13, %c0_14], %22 {strides = array<i32>} : memref<16x128xf32, #tpu.memory_space<vmem>>, vector<16x128xf32>,
    return
  }
  func.func @transform_0(%arg0: i32) -> (i32, i32) {
    %c0_i32 = arith.constant 0 : i32
    %c0_i32_0 = arith.constant 0 : i32
    return %arg0, %c0_i32 : i32, i32
  }
  func.func @transform_1(%arg0: i32) -> (i32, i32) {
    %c0_i32 = arith.constant 0 : i32
    %c0_i32_0 = arith.constant 0 : i32
    return %arg0, %c0_i32 : i32, i32
  }
  func.func @transform_2(%arg0: i32) -> (i32, i32) {
    %c0_i32 = arith.constant 0 : i32
    %c0_i32_0 = arith.constant 0 : i32
    %c0_i32_1 = arith.constant 0 : i32
    return %c0_i32, %c0_i32_0 : i32, i32
  }
  func.func @transform_3(%arg0: i32) -> (i32, i32) {
    %c0_i32 = arith.constant 0 : i32
    %c0_i32_0 = arith.constant 0 : i32
    %c0_i32_1 = arith.constant 0 : i32
    return %c0_i32, %c0_i32_0 : i32, i32
  }
  func.func @transform_4(%arg0: i32) -> (i32, i32) {
    %c0_i32 = arith.constant 0 : i32
    %c0_i32_0 = arith.constant 0 : i32
    %c0_i32_1 = arith.constant 0 : i32
    return %c0_i32, %c0_i32_0 : i32, i32
  }
  func.func @transform_5(%arg0: i32) -> (i32, i32) {
    %c0_i32 = arith.constant 0 : i32
    %c0_i32_0 = arith.constant 0 : i32
    return %arg0, %c0_i32 : i32, i32
  }
}

</mosaic_0001>

<bundles_post_ra>
// kernel: corect_dense_logprob.1
= control target key start
LH: loop header
LB: loop body
LE: loop exit
PB: predicated region body
PF: predicated region fallthrough
CT: control target
= control target key end

     0   :  { %v315_v0 = vmov 0.0|0.0   ;;  %vm44_vm0 = vcmask 130048   ;;  %vm139_vm1 = vcmask 261120   ;;  %s441_s2 = inlined_call_operand.vmem [shape: f32[144,32], index: 2, kind: input, shape index: {}]   ;;  %s442_s0 = inlined_call_operand.vmem [shape: f32[16,144], index: 0, kind: input, shape index: {}]   ;;  %s443_s3 = inlined_call_operand.vmem [shape: f32[32,128], index: 3, kind: input, shape index: {}]   ;;  %s444_s1 = inlined_call_operand.vmem [shape: f32[16,32], index: 1, kind: input, shape index: {}]   ;;  %s445_s4 = inlined_call_operand.vmem [shape: f32[1,128], index: 4, kind: input, shape index: {}]   ;;  %s446_s5 = inlined_call_operand.vmem [shape: f32[16,128], index: 5, kind: output, shape index: {}]  }
   0x1   :  { %271 = vmatprep.subr.bf16.mxu0 %v315_v0  ;;  %v24_v1 = vld [vmem:[%s441_s2] sm:$0xff]  ;;  %v25_v2 = vld [vmem:[%s441_s2 + $0x8] sm:$0xff]  ;;  %v26_v3 = vld [vmem:[%s441_s2 + $0x10] sm:$0xff] }
   0x2   :  { %v272_v4 = vpack.c.bf16 %v25_v2, %v24_v1  ;;  %v27_v5 = vld [vmem:[%s441_s2 + $0x18] sm:$0xff]  ;;  %v28_v7 = vld [vmem:[%s441_s2 + $0x20] sm:$0xff]  ;;  %v29_v8 = vld [vmem:[%s441_s2 + $0x28] sm:$0xff] }
   0x3   :  { %v275_v6 = vpack.c.bf16 %v27_v5, %v26_v3  ;;  %v21_v9 = vld [vmem:[%s442_s0 + $0x8] sm:$0xff]  ;;  %v278_v10 = vpack.c.bf16 %v29_v8, %v28_v7  ;;  %v30_v11 = vld [vmem:[%s441_s2 + $0x30] sm:$0xff]  ;;  %v31_v12 = vld [vmem:[%s441_s2 + $0x38] sm:$0xff] }
   0x4   :  { %273 = vmatpush1.bf16.msra.mxu0 %v272_v4  ;;  %249 = vmatprep.mubr.msk.f32.mxu0 %vm44_vm0, %v21_v9  ;;  %v281_v13 = vpack.c.bf16 %v31_v12, %v30_v11  ;;  %v32_v14 = vld [vmem:[%s441_s2 + $0x40] sm:$0xff]  ;;  %v33_v15 = vld [vmem:[%s441_s2 + $0x48] sm:$0xff]  ;;  %v34_v17 = vld [vmem:[%s441_s2 + $0x50] sm:$0xff] }
   0x5   :  { %274 = vmatprep.subr.bf16.mxu0 %v315_v0  ;;  %v284_v16 = vpack.c.bf16 %v33_v15, %v32_v14  ;;  %v35_v18 = vld [vmem:[%s441_s2 + $0x58] sm:$0xff]  ;;  %v36_v20 = vld [vmem:[%s441_s2 + $0x60] sm:$0xff]  ;;  %v37_v21 = vld [vmem:[%s441_s2 + $0x68] sm:$0xff] }
   0x6   :  { %v287_v19 = vpack.c.bf16 %v35_v18, %v34_v17  ;;  %v290_v22 = vpack.c.bf16 %v37_v21, %v36_v20  ;;  %v38_v23 = vld [vmem:[%s441_s2 + $0x70] sm:$0xff]  ;;  %v39_v24 = vld [vmem:[%s441_s2 + $0x78] sm:$0xff]  ;;  %v40_v26 = vld [vmem:[%s441_s2 + $0x80] sm:$0xff] }
   0x7   :  { %v293_v25 = vpack.c.bf16 %v39_v24, %v38_v23  ;;  %v41_v27 = vld [vmem:[%s441_s2 + $0x88] sm:$0xff]  ;;  %v20_v29 = vld [vmem:[%s442_s0] sm:$0xff]  ;;  %v23_v30 = vld [vmem:[%s442_s0 + $0x18] sm:$0xff] }
   0x8   :  { %276 = vmatpush1.bf16.msra.mxu0 %v275_v6  ;;  %v296_v28 = vpack.c.bf16 %v41_v27, %v40_v26  ;;  %v22_v31 = vld [vmem:[%s442_s0 + $0x10] sm:$0xff]  ;;  %v128_v32 = vld [vmem:[%s443_s3] sm:$0xff]  ;;  %v129_v33 = vld [vmem:[%s443_s3 + $0x8] sm:$0xff] }
   0x9   :  { %277 = vmatprep.subr.bf16.mxu0 %v315_v0  ;;  %v298_v34 = vpack.c.bf16 %v129_v33, %v128_v32  ;;  %v130_v35 = vld [vmem:[%s443_s3 + $0x10] sm:$0xff]  ;;  %v131_v36 = vld [vmem:[%s443_s3 + $0x18] sm:$0xff]  ;;  %v42_v38 = vld [vmem:[%s444_s1] sm:$0xff] }
   0xa   :  { %v302_v37 = vpack.c.bf16 %v131_v36, %v130_v35  ;;  %v43_v42 = vld [vmem:[%s444_s1 + $0x8] sm:$0xff]  ;;  %v251_v48 = vld [vmem:[%s445_s4] ss:$0 sm:$0xff] }
   0xb   :  { %299 = vmatprep.subr.bf16.mxu1 %v298_v34 }
   0xc   :  { %279 = vmatpush1.bf16.msra.mxu0 %v278_v10  ;;  %301 = vmatpush3.bf16.msra.mxu1 %v298_v34 }
   0xd   :  { %280 = vmatprep.subr.bf16.mxu0 %v315_v0  ;;  %303 = vmatprep.subr.bf16.mxu1 %v302_v37 }
  0x10   :  { %282 = vmatpush1.bf16.msra.mxu0 %v281_v13  ;;  %305 = vmatpush3.bf16.msra.mxu1 %v302_v37 }
  0x11   :  { %283 = vmatprep.subr.bf16.mxu0 %v315_v0 }
  0x14   :  { %285 = vmatpush1.bf16.msra.mxu0 %v284_v16 }
  0x15   :  { %286 = vmatprep.subr.bf16.mxu0 %v315_v0 }
  0x18   :  { %288 = vmatpush1.bf16.msra.mxu0 %v287_v19 }
  0x19   :  { %289 = vmatprep.subr.bf16.mxu0 %v315_v0 }
  0x1c   :  { %291 = vmatpush1.bf16.msra.mxu0 %v290_v22 }
  0x1d   :  { %292 = vmatprep.subr.bf16.mxu0 %v315_v0 }
  0x20   :  { %294 = vmatpush1.bf16.msra.mxu0 %v293_v25 }
  0x21   :  { %295 = vmatprep.subr.bf16.mxu0 %v315_v0 }
  0x24   :  { %297 = vmatpush1.bf16.msra.mxu0 %v296_v28 }
  0x27   :  { %116 = vmatmul.mubr.f32.vlgmr.msra.gmra.mrb[0].mxu0 %v20_v29 }
  0x28   :  { %250 = vmatprep.mubr.msk.f32.mxu0 %vm44_vm0, %v23_v30 }
  0x2b   :  { %121 = vmatmul.mubr.f32.gmra.mrb[2].mxu0 %v22_v31 }
  0xfa   :  { %v117_v39 = vpop.f32.mrb[0].mxu0 }
  0xfb   :  { %v118_v40 = vadd.f32 %v117_v39, %v42_v38  ;;  %v119_v41 = vpop.f32.mrb[1].mxu0 }
  0xfd   :  { %v126_v43 = vmax.f32 %v118_v40, 0.0 }
  0xfe   :  { %v122_v44 = vpop.f32.mrb[2].mxu0 }
  0xff   :  { %v123_v45 = vadd.f32 %v122_v44, %v43_v42  ;;  %v124_v46 = vpop.f32.mrb[3].mxu0  ;;  %268 = vmatprep.mubr.msk.f32.mxu1 %vm139_vm1, %v126_v43 }
 0x101   :  { %v127_v47 = vmax.f32 %v123_v45, 0.0 }
 0x103   :  { %269 = vmatmul.mubr.msk.f32.vlgmr.msra.gmra.mrb[0].mxu1 %vm139_vm1, %v127_v47 }
 0x1d6   :  { %v270_v49 = vpop.f32.mrb[0].mxu1 }
 0x1d7   :  { %v212_v50 = vpop.f32.mrb[1].mxu1  ;;  %v218_v52 = vadd.f32 %v270_v49, %v251_v48 }
 0x1d8   :  { %v213_v51 = vadd.f32 %v251_v48, %v212_v50 }
 0x1da   :  { %221 = vmax.xlane.f32.xlu0 %v213_v51 }
 0x1de   :  { %223 = vmax.xlane.f32.xlu0 %v218_v52 }
 0x267   :  { %v222_v53 = vpop.xlane.xlu0 %221 }
 0x268   :  { %v225_v54 = vsub.f32 %v213_v51, %v222_v53 }
 0x26a   :  { %v227_v55 = vmul.f32 1.442695, %v225_v54 }
 0x26b   :  { %v224_v56 = vpop.xlane.xlu0 %223 }
 0x26c   :  { %v226_v57 = vsub.f32 %v218_v52, %v224_v56  ;;  %307 = vpow2.f32 %v227_v55 }
 0x26e   :  { %v229_v58 = vmul.f32 1.442695, %v226_v57 }
 0x270   :  { %309 = vpow2.f32 %v229_v58 }
 0x276   :  { %v308_v59 = vpop.eup %307 }
 0x277   :  { %231 = vadd.xlane.f32.xlu1 %v308_v59 }
 0x27a   :  { %v310_v60 = vpop.eup %309 }
 0x27b   :  { %233 = vadd.xlane.f32.xlu1 %v310_v60 }
 0x304   :  { %v232_v61 = vpop.xlane.xlu1 %231 }
 0x305   :  { %311 = vlog2.f32 %v232_v61 }
 0x308   :  { %v234_v62 = vpop.xlane.xlu1 %233 }
 0x309   :  { %313 = vlog2.f32 %v234_v62 }
 0x30f   :  { %v312_v63 = vpop.eup %311 }
 0x310   :  { %v236_v0 = vmul.f32 0.6931472, %v312_v63 }
 0x312   :  { %v239_v1 = vadd.f32 %v236_v0, %v222_v53 }
 0x313   :  { %v314_v2 = vpop.eup %313 }
 0x314   :  { %v241_v3 = vsub.f32 %v213_v51, %v239_v1  ;;  %v238_v4 = vmul.f32 0.6931472, %v314_v2 }
 0x316   :  { %243 = vst [vmem:[%s446_s5] sm:$0xff] %v241_v3  ;;  %v240_v5 = vadd.f32 %v238_v4, %v224_v56 }
 0x318   :  { %v242_v6 = vsub.f32 %v218_v52, %v240_v5 }
 0x31a   :  { %244 = vst [vmem:[%s446_s5 + $0x8] sm:$0xff] %v242_v6 }

</bundles_post_ra>
